<compile_context>
chip_gen: v7x
topology: tpu7x:2x2x1
jax: 0.10.0
libtpu: 0.0.40
codegen_flags: <defaults>
</compile_context>

<pallas_src>
import jax
import jax.numpy as jnp
from jax.experimental import pallas as pl
from jax.experimental.pallas import tpu as pltpu


def _round_up(x: int, m: int) -> int:
    return (x + m - 1) // m * m


def mlp_kernel(x_ref, w1_ref, b1_ref, w2_ref, b2_ref, o_ref):
    # x_ref:  (TB, Dp)   w1_ref: (Dp, Hp)   b1_ref: (1, Hp)
    # w2_ref: (Hp, Op)   b2_ref: (1, Op)    o_ref:  (TB, Op)
    h = jnp.dot(x_ref[...], w1_ref[...], preferred_element_type=jnp.float32)
    h = jnp.maximum(h + b1_ref[...], 0.0)          # bias + ReLU (lane-aligned VPU)
    y = jnp.dot(h, w2_ref[...], preferred_element_type=jnp.float32)
    o_ref[...] = jnp.maximum(y + b2_ref[...], 0.0)  # bias + ReLU


def fashion_mnist_model_v1(x_nchw, w1, b1, w2, b2, *, batch_tile=512):
    """Forward pass. x_nchw: (B, C, Hh, Ww) float32. Returns (B, O) float32."""
    B = x_nchw.shape[0]
    x = x_nchw.reshape(B, -1)                       # nn.Flatten (twice is a no-op)
    D, H = w1.shape
    _, O = w2.shape

    # Lane-dense padding (all last dims -> multiples of 128, batch -> mult of 8).
    Dp = _round_up(D, 128)
    Hp = _round_up(H, 128)
    Op = _round_up(O, 128)

    # Batch tile: multiple of 8, capped at `batch_tile` (keeps per-step VMEM
    # small enough for v7x's 64 MiB while amortizing per-step overhead).
    TB = min(batch_tile, _round_up(B, 8))
    Bp = _round_up(B, TB)

    f32 = jnp.float32
    xp = jnp.pad(x.astype(f32), ((0, Bp - B), (0, Dp - D)))
    w1p = jnp.pad(w1.astype(f32), ((0, Dp - D), (0, Hp - H)))
    b1p = jnp.pad(b1.astype(f32).reshape(1, H), ((0, 0), (0, Hp - H)))
    w2p = jnp.pad(w2.astype(f32), ((0, Hp - H), (0, Op - O)))
    b2p = jnp.pad(b2.astype(f32).reshape(1, O), ((0, 0), (0, Op - O)))

    grid = (Bp // TB,)

    cost = pl.CostEstimate(
        flops=2 * Bp * Dp * Hp + 2 * Bp * Hp * Op,
        transcendentals=0,
        bytes_accessed=4 * (Bp * Dp + Dp * Hp + Hp + Hp * Op + Op + Bp * Op),
    )

    out_padded = pl.pallas_call(
        mlp_kernel,
        out_shape=jax.ShapeDtypeStruct((Bp, Op), f32),
        grid=grid,
        in_specs=[
            pl.BlockSpec((TB, Dp), lambda i: (i, 0)),   # activation tile marches over batch
            pl.BlockSpec((Dp, Hp), lambda i: (0, 0)),   # weights resident across steps
            pl.BlockSpec((1, Hp), lambda i: (0, 0)),
            pl.BlockSpec((Hp, Op), lambda i: (0, 0)),
            pl.BlockSpec((1, Op), lambda i: (0, 0)),
        ],
        out_specs=pl.BlockSpec((TB, Op), lambda i: (i, 0)),
        compiler_params=pltpu.CompilerParams(
            dimension_semantics=("parallel",)),         # shard batch across TCs (v7x)
        cost_estimate=cost,
    )(xp, w1p, b1p, w2p, b2p)

    # Strip batch / output-lane padding.
    return out_padded[:B, :O]


def init_linear_params(key, in_features, out_features):
    """Deterministic init mimicking PyTorch nn.Linear defaults:
    U(-1/sqrt(in), 1/sqrt(in)) for both weight and bias."""
    k_w, k_b = jax.random.split(key)
    bound = 1.0 / jnp.sqrt(jnp.float32(in_features))
    # PyTorch stores W as (out, in); we keep the transposed (in, out) layout.
    w = jax.random.uniform(k_w, (in_features, out_features),
                           minval=-bound, maxval=bound, dtype=jnp.float32)
    b = jax.random.uniform(k_b, (out_features,),
                           minval=-bound, maxval=bound, dtype=jnp.float32)
    return w, b


if __name__ == "__main__":
    key = jax.random.PRNGKey(0)
    k_x, k_l1, k_l2 = jax.random.split(key, 3)

    # Small shapes consistent with the module's forward:
    #   batch=8, channels=1, spatial=16x16 -> input_shape = 256
    #   hidden_units = 32, output_shape = 10
    B, C, Hh, Ww = 8, 1, 16, 16
    D = C * Hh * Ww
    HID, OUT = 32, 10

    x = jax.random.normal(k_x, (B, C, Hh, Ww), dtype=jnp.float32)
    w1, b1 = init_linear_params(k_l1, D, HID)
    w2, b2 = init_linear_params(k_l2, HID, OUT)

    out = fashion_mnist_model_v1(x, w1, b1, w2, b2)
    out = jax.block_until_ready(out)

    # Reference check in plain JAX (same math as the PyTorch module).
    ref = jnp.maximum(
        jnp.maximum(x.reshape(B, -1) @ w1 + b1, 0.0) @ w2 + b2, 0.0)
    assert out.shape == (B, OUT)
    assert jnp.allclose(out, ref, atol=1e-5, rtol=1e-5)

    print("KERNEL_OK")
</pallas_src>

<mosaic_0001>
module attributes {stable_mosaic.version = 11 : i64} {
  func.func @mlp_kernel(%arg0: i32, %arg1: memref<8x256xf32, #tpu.memory_space<vmem>>, %arg2: memref<256x128xf32, #tpu.memory_space<vmem>>, %arg3: memref<1x128xf32, #tpu.memory_space<vmem>>, %arg4: memref<128x128xf32, #tpu.memory_space<vmem>>, %arg5: memref<1x128xf32, #tpu.memory_space<vmem>>, %arg6: memref<8x128xf32, #tpu.memory_space<vmem>>) attributes {dimension_semantics = [#tpu.dimension_semantics<parallel>], iteration_bounds = array<i64: 1>, scalar_prefetch = 0 : i64, scratch_operands = 0 : i64, tpu.core_type = #tpu.core_type<tc>, window_params = [{transform_indices = @transform_0, window_bounds = array<i64: 8, 256>}, {pipeline_mode = #tpu.pipeline_mode<synchronous>, transform_indices = @transform_1, window_bounds = array<i64: 256, 128>}, {pipeline_mode = #tpu.pipeline_mode<synchronous>, transform_indices = @transform_2, window_bounds = array<i64: 1, 128>}, {pipeline_mode = #tpu.pipeline_mode<synchronous>, transform_indices = @transform_3, window_bounds = array<i64: 128, 128>}, {pipeline_mode = #tpu.pipeline_mode<synchronous>, transform_indices = @transform_4, window_bounds = array<i64: 1, 128>}, {transform_indices = @transform_5, window_bounds = array<i64: 8, 128>}]} {
    %c0 = arith.constant 0 : index
    %c0_0 = arith.constant 0 : index
    %0 = vector.load %arg1[%c0, %c0_0] : memref<8x256xf32, #tpu.memory_space<vmem>>, vector<8x256xf32>
    %c0_1 = arith.constant 0 : index
    %c0_2 = arith.constant 0 : index
    %1 = vector.load %arg2[%c0_1, %c0_2] : memref<256x128xf32, #tpu.memory_space<vmem>>, vector<256x128xf32>
    %cst = arith.constant dense<0.000000e+00> : vector<8x128xf32>
    %2 = tpu.matmul %0, %1, %cst {dimension_numbers = #tpu.dot_dimension_numbers<[1], [0], [0], [1], [0, 0, 1, 1], [], []>} : vector<8x256xf32>, vector<256x128xf32>, vector<8x128xf32> -> vector<8x128xf32>
    %c0_3 = arith.constant 0 : index
    %c0_4 = arith.constant 0 : index
    %3 = vector.load %arg3[%c0_3, %c0_4] : memref<1x128xf32, #tpu.memory_space<vmem>>, vector<1x128xf32>
    %4 = vector.broadcast %3 : vector<1x128xf32> to vector<8x128xf32>
    %5 = arith.addf %2, %4 : vector<8x128xf32>
    %cst_5 = arith.constant 0.000000e+00 : f32
    %6 = vector.broadcast %cst_5 : f32 to vector<8x128xf32>
    %7 = arith.maximumf %5, %6 : vector<8x128xf32>
    %c0_6 = arith.constant 0 : index
    %c0_7 = arith.constant 0 : index
    %8 = vector.load %arg4[%c0_6, %c0_7] : memref<128x128xf32, #tpu.memory_space<vmem>>, vector<128x128xf32>
    %cst_8 = arith.constant dense<0.000000e+00> : vector<8x128xf32>
    %9 = tpu.matmul %7, %8, %cst_8 {dimension_numbers = #tpu.dot_dimension_numbers<[1], [0], [0], [1], [0, 0, 1, 1], [], []>} : vector<8x128xf32>, vector<128x128xf32>, vector<8x128xf32> -> vector<8x128xf32>
    %c0_9 = arith.constant 0 : index
    %c0_10 = arith.constant 0 : index
    %10 = vector.load %arg5[%c0_9, %c0_10] : memref<1x128xf32, #tpu.memory_space<vmem>>, vector<1x128xf32>
    %11 = vector.broadcast %10 : vector<1x128xf32> to vector<8x128xf32>
    %12 = arith.addf %9, %11 : vector<8x128xf32>
    %cst_11 = arith.constant 0.000000e+00 : f32
    %13 = vector.broadcast %cst_11 : f32 to vector<8x128xf32>
    %14 = arith.maximumf %12, %13 : vector<8x128xf32>
    %c0_12 = arith.constant 0 : index
    %c0_13 = arith.constant 0 : index
    %15 = vector.load %arg6[%c0_12, %c0_13] : memref<8x128xf32, #tpu.memory_space<vmem>>, vector<8x128xf32>
    tpu.vector_store %arg6[%c0_12, %c0_13], %14 {strides = array<i32>} : memref<8x128xf32, #tpu.memory_space<vmem>>, vector<8x128xf32>,
    return
  }
  func.func @transform_0(%arg0: i32) -> (i32, i32) {
    %c0_i32 = arith.constant 0 : i32
    %c0_i32_0 = arith.constant 0 : i32
    return %arg0, %c0_i32 : i32, i32
  }
  func.func @transform_1(%arg0: i32) -> (i32, i32) {
    %c0_i32 = arith.constant 0 : i32
    %c0_i32_0 = arith.constant 0 : i32
    %c0_i32_1 = arith.constant 0 : i32
    return %c0_i32, %c0_i32_0 : i32, i32
  }
  func.func @transform_2(%arg0: i32) -> (i32, i32) {
    %c0_i32 = arith.constant 0 : i32
    %c0_i32_0 = arith.constant 0 : i32
    %c0_i32_1 = arith.constant 0 : i32
    return %c0_i32, %c0_i32_0 : i32, i32
  }
  func.func @transform_3(%arg0: i32) -> (i32, i32) {
    %c0_i32 = arith.constant 0 : i32
    %c0_i32_0 = arith.constant 0 : i32
    %c0_i32_1 = arith.constant 0 : i32
    return %c0_i32, %c0_i32_0 : i32, i32
  }
  func.func @transform_4(%arg0: i32) -> (i32, i32) {
    %c0_i32 = arith.constant 0 : i32
    %c0_i32_0 = arith.constant 0 : i32
    %c0_i32_1 = arith.constant 0 : i32
    return %c0_i32, %c0_i32_0 : i32, i32
  }
  func.func @transform_5(%arg0: i32) -> (i32, i32) {
    %c0_i32 = arith.constant 0 : i32
    %c0_i32_0 = arith.constant 0 : i32
    return %arg0, %c0_i32 : i32, i32
  }
}

</mosaic_0001>

<bundles_post_ra>
// kernel: tpu_custom_call.1
= control target key start
LH: loop header
LB: loop body
LE: loop exit
PB: predicated region body
PF: predicated region fallthrough
CT: control target
= control target key end

     0   :  { %10 = vsyncpa [#allocation3], 0  ;;  %s638_s0 = inlined_call_operand.hbm [shape: f32[8,256], index: 0, kind: input, shape index: {}]   ;;  %s639_s1 = inlined_call_operand.hbm [shape: f32[256,128], index: 1, kind: input, shape index: {}]   ;;  %s640_s2 = inlined_call_operand.vmem [shape: f32[1,128], index: 2, kind: input, shape index: {}]   ;;  %s641_s3 = inlined_call_operand.hbm [shape: f32[128,128], index: 3, kind: input, shape index: {}]   ;;  %s642_s4 = inlined_call_operand.vmem [shape: f32[1,128], index: 4, kind: input, shape index: {}]   ;;  %s643_s5 = inlined_call_operand.hbm [shape: f32[8,128], index: 5, kind: output, shape index: {}]  }
   0x1   :  { %11 = vsyncpa [#allocation6], 0 }
   0x2   :  { %12 = vsyncpa [#allocation4], 0  ;;  %s531_s18 = smov [#allocation5]   ;;  %s437_s22 = scalar_lea.hbm %s639_s1, 4096 }
   0x3   :  { %s28_s19 = sshll.u32 %s531_s18, 4  ;;  %p438_p0 = scmp.ne.s32.totalorder %s639_s1, %s437_s22  ;;  %s29_s19 = int_to_ptr.vmem [resolvable:$true] %s28_s19 }
   0x4   :  { %p441_p1 = scmp.lt.u32.totalorder %s437_s22, %s639_s1 }
   0x6   :  { %p443_p2 = pnand %p441_p1, %p438_p0 }
   0x8   :  { %446 = shalt.err (!%p443_p2)
}
   0x9   :  { %s447_s27 = scalar_lea.vmem %s29_s19, 4096  ;;  %p452_p4 = scmp.lt.s32.totalorder %s29_s19, %s29_s19 }
   0xa   :  { %p448_p3 = scmp.ne.s32.totalorder %s29_s19, %s447_s27  ;;  %p453_p5 = scmp.lt.s32.totalorder %s447_s27, %s447_s27 }
   0xc   :  { %p454_p6 = por %p453_p5, %p452_p4 }
   0xe   :  { %p455_p7 = pnand %p454_p6, %p448_p3 }
  0x10   :  { %458 = shalt.err (!%p455_p7)
}
  0x11   :  { %s532_s28 = smov 128   ;;  %s533_s29 = smov 8  }
  0x12   :  { %34 = dma.hbm_to_vmem [thread:$0]  %s639_s1, 4096, %s29_s19, [#allocation6], %s532_s28, %s532_s28, %s533_s29  }
  0x13   :  { %s534_s7 = smov [#allocation2]   ;;  %s535_s9 = smov [#allocation7]  }
  0x14   :  { %s19_s8 = sshll.u32 %s534_s7, 4  ;;  %s42_s10 = sshll.u32 %s535_s9, 4  ;;  %s20_s8 = int_to_ptr.vmem [resolvable:$true] %s19_s8  ;;  %s43_s10 = int_to_ptr.vmem [resolvable:$true] %s42_s10 }
  0x15   :  { %s459_s13 = scalar_lea.hbm %s638_s0, 256 }
  0x16   :  { %p460_p8 = scmp.ne.s32.totalorder %s638_s0, %s459_s13  ;;  %p463_p9 = scmp.lt.u32.totalorder %s459_s13, %s638_s0 }
  0x18   :  { %p465_p10 = pnand %p463_p9, %p460_p8 }
  0x1a   :  { %468 = shalt.err (!%p465_p10)
}
  0x1b   :  { %s469_s1 = scalar_lea.vmem %s20_s8, 256  ;;  %p474_p12 = scmp.lt.s32.totalorder %s20_s8, %s20_s8 }
  0x1c   :  { %p470_p11 = scmp.ne.s32.totalorder %s20_s8, %s469_s1  ;;  %p475_p13 = scmp.lt.s32.totalorder %s469_s1, %s469_s1 }
  0x1e   :  { %p476_p0 = por %p475_p13, %p474_p12 }
  0x20   :  { %p477_p1 = pnand %p476_p0, %p470_p11 }
  0x22   :  { %480 = shalt.err (!%p477_p1)
}
  0x23   :  { %22 = dma.hbm_to_vmem [thread:$0]  %s638_s0, 256, %s20_s8, [#allocation3]  }
  0x24   :  { %s481_s22 = scalar_lea.hbm %s641_s3, 2048 }
  0x25   :  { %p482_p2 = scmp.ne.s32.totalorder %s641_s3, %s481_s22  ;;  %p485_p3 = scmp.lt.u32.totalorder %s481_s22, %s641_s3 }
  0x27   :  { %p487_p4 = pnand %p485_p3, %p482_p2 }
  0x29   :  { %490 = shalt.err (!%p487_p4)
}
  0x2a   :  { %s491_s27 = scalar_lea.vmem %s43_s10, 2048  ;;  %p496_p6 = scmp.lt.s32.totalorder %s43_s10, %s43_s10 }
  0x2b   :  { %p492_p5 = scmp.ne.s32.totalorder %s43_s10, %s491_s27  ;;  %p497_p7 = scmp.lt.s32.totalorder %s491_s27, %s491_s27 }
  0x2d   :  { %p498_p8 = por %p497_p7, %p496_p6 }
  0x2f   :  { %p499_p9 = pnand %p498_p8, %p492_p5 }
  0x31   :  { %502 = shalt.err (!%p499_p9)
}
  0x32   :  { %48 = dma.hbm_to_vmem [thread:$0]  %s641_s3, 2048, %s43_s10, [#allocation6], %s532_s28, %s532_s28, %s533_s29  }
  0x33   :  { %525 = dma.done.wait [#allocation3], 256  }
  0x34   :  { %526 = vsyncadd [#allocation3], 4294967040 }
  0x35   :  { %527 = dma.done.wait [#allocation6], 6144  }
  0x36   :  { %528 = vsyncadd [#allocation6], 4294961152  ;;  %v536_v0 = vmov 0.0|0.0   ;;  %v78_v1 = vld [vmem:[#allocation5 + $0x80] sm:$0xff]  ;;  %v79_v2 = vld [vmem:[#allocation5 + $0x88] sm:$0xff]  ;;  %vm537_vm0 = vmmov 0  }
  0x37   :  { %404 = vmatprep.subr.bf16.mxu1 %v536_v0  ;;  %v62_v3 = vld [vmem:[#allocation5] sm:$0xff]  ;;  %v372_v4 = vpack.c.bf16 %v79_v2, %v78_v1  ;;  %v63_v5 = vld [vmem:[#allocation5 + $0x8] sm:$0xff]  ;;  %v80_v6 = vld [vmem:[#allocation5 + $0x90] sm:$0xff]  ;;  %s539_s7 = smov [#allocation8]  }
  0x38   :  { %v81_v7 = vld [vmem:[#allocation5 + $0x98] sm:$0xff]  ;;  %v374_v8 = vpack.c.bf16 %v63_v5, %v62_v3  ;;  %v64_v10 = vld [vmem:[#allocation5 + $0x10] sm:$0xff]  ;;  %v82_v12 = vld [vmem:[#allocation5 + $0xa0] sm:$0xff]  ;;  %s273_s8 = sshll.u32 %s539_s7, 4  ;;  %s274_s8 = int_to_ptr.vmem [resolvable:$true] %s273_s8 }
  0x39   :  { %v376_v9 = vpack.c.bf16 %v81_v7, %v80_v6  ;;  %v65_v11 = vld [vmem:[#allocation5 + $0x18] sm:$0xff]  ;;  %373 = vmatprep.subr.bf16.mxu0 %v372_v4  ;;  %v83_v13 = vld [vmem:[#allocation5 + $0xa8] sm:$0xff]  ;;  %v66_v16 = vld [vmem:[#allocation5 + $0x20] sm:$0xff]  ;;  %s503_s9 = scalar_lea.vmem %s274_s8, 128  ;;  %p508_p11 = scmp.lt.s32.totalorder %s274_s8, %s274_s8 }
  0x3a   :  { %375 = vmatpush3.bf16.msra.mxu0 %v374_v8  ;;  %v378_v14 = vpack.c.bf16 %v65_v11, %v64_v10  ;;  %v380_v15 = vpack.c.bf16 %v83_v13, %v82_v12  ;;  %v67_v17 = vld [vmem:[#allocation5 + $0x28] sm:$0xff]  ;;  %v84_v18 = vld [vmem:[#allocation5 + $0xb0] sm:$0xff]  ;;  %v85_v19 = vld [vmem:[#allocation5 + $0xb8] sm:$0xff]  ;;  %v538_v12 = vmov 0.0   ;;  %p504_p10 = scmp.ne.s32.totalorder %s274_s8, %s503_s9  ;;  %p509_p12 = scmp.lt.s32.totalorder %s503_s9, %s503_s9 }
  0x3b   :  { %377 = vmatprep.subr.bf16.mxu0 %v376_v9  ;;  %v382_v20 = vpack.c.bf16 %v67_v17, %v66_v16  ;;  %v384_v21 = vpack.c.bf16 %v85_v19, %v84_v18  ;;  %v68_v22 = vld [vmem:[#allocation5 + $0x30] sm:$0xff]  ;;  %v69_v23 = vld [vmem:[#allocation5 + $0x38] sm:$0xff]  ;;  %v86_v24 = vld [vmem:[#allocation5 + $0xc0] sm:$0xff]  ;;  %369 = vmatprep.mubr.msk.f32.mxu1 %vm537_vm0, %v538_v12 }
  0x3c   :  { %v87_v25 = vld [vmem:[#allocation5 + $0xc8] sm:$0xff]  ;;  %v61_v26 = vld [vmem:[#allocation2 + $0x8] sm:$0xff]  ;;  %v172_v27 = vld [vmem:[#allocation7] sm:$0xff]  ;;  %v386_v29 = vpack.c.bf16 %v69_v23, %v68_v22  ;;  %p510_p13 = por %p509_p12, %p508_p11 }
  0x3d   :  { %165 = vmatprep.mubr.f32.mxu0 %v61_v26  ;;  %v173_v28 = vld [vmem:[#allocation7 + $0x8] sm:$0xff]  ;;  %v174_v31 = vld [vmem:[#allocation7 + $0x10] sm:$0xff]  ;;  %v175_v32 = vld [vmem:[#allocation7 + $0x18] sm:$0xff]  ;;  %v388_v33 = vpack.c.bf16 %v87_v25, %v86_v24 }
  0x3e   :  { %379 = vmatpush3.bf16.msra.mxu0 %v378_v14  ;;  %v405_v30 = vpack.c.bf16 %v173_v28, %v172_v27  ;;  %v70_v34 = vld [vmem:[#allocation5 + $0x40] sm:$0xff]  ;;  %v71_v35 = vld [vmem:[#allocation5 + $0x48] sm:$0xff]  ;;  %v88_v36 = vld [vmem:[#allocation5 + $0xd0] sm:$0xff]  ;;  %v408_v38 = vpack.c.bf16 %v175_v32, %v174_v31  ;;  %p511_p0 = pnand %p510_p13, %p504_p10 }
  0x3f   :  { %381 = vmatprep.subr.bf16.mxu0 %v380_v15  ;;  %v89_v37 = vld [vmem:[#allocation5 + $0xd8] sm:$0xff]  ;;  %v176_v39 = vld [vmem:[#allocation7 + $0x20] sm:$0xff]  ;;  %v177_v40 = vld [vmem:[#allocation7 + $0x28] sm:$0xff]  ;;  %v390_v41 = vpack.c.bf16 %v71_v35, %v70_v34 }
  0x40   :  { %406 = vmatpush3.bf16.msra.mxu1 %v405_v30  ;;  %v392_v42 = vpack.c.bf16 %v89_v37, %v88_v36  ;;  %v72_v43 = vld [vmem:[#allocation5 + $0x50] sm:$0xff]  ;;  %v73_v44 = vld [vmem:[#allocation5 + $0x58] sm:$0xff]  ;;  %v90_v45 = vld [vmem:[#allocation5 + $0xe0] sm:$0xff]  ;;  %v411_v47 = vpack.c.bf16 %v177_v40, %v176_v39 }
  0x41   :  { %407 = vmatprep.subr.bf16.mxu1 %v536_v0  ;;  %v91_v46 = vld [vmem:[#allocation5 + $0xe8] sm:$0xff]  ;;  %v178_v48 = vld [vmem:[#allocation7 + $0x30] sm:$0xff]  ;;  %v179_v49 = vld [vmem:[#allocation7 + $0x38] sm:$0xff]  ;;  %v394_v50 = vpack.c.bf16 %v73_v44, %v72_v43 }
  0x42   :  { %383 = vmatpush3.bf16.msra.mxu0 %v382_v20  ;;  %v396_v51 = vpack.c.bf16 %v91_v46, %v90_v45  ;;  %v74_v52 = vld [vmem:[#allocation5 + $0x60] sm:$0xff]  ;;  %v75_v53 = vld [vmem:[#allocation5 + $0x68] sm:$0xff]  ;;  %v92_v54 = vld [vmem:[#allocation5 + $0xf0] sm:$0xff]  ;;  %v414_v56 = vpack.c.bf16 %v179_v49, %v178_v48 }
  0x43   :  { %385 = vmatprep.subr.bf16.mxu0 %v384_v21  ;;  %v93_v55 = vld [vmem:[#allocation5 + $0xf8] sm:$0xff]  ;;  %v180_v57 = vld [vmem:[#allocation7 + $0x40] sm:$0xff]  ;;  %v181_v58 = vld [vmem:[#allocation7 + $0x48] sm:$0xff]  ;;  %v398_v59 = vpack.c.bf16 %v75_v53, %v74_v52 }
  0x44   :  { %409 = vmatpush3.bf16.msra.mxu1 %v408_v38  ;;  %v400_v60 = vpack.c.bf16 %v93_v55, %v92_v54  ;;  %v76_v61 = vld [vmem:[#allocation5 + $0x70] sm:$0xff]  ;;  %v77_v62 = vld [vmem:[#allocation5 + $0x78] sm:$0xff]  ;;  %v417_v63 = vpack.c.bf16 %v181_v58, %v180_v57  ;;  %v184_v6 = vld [vmem:[#allocation7 + $0x60] sm:$0xff] }
  0x45   :  { %410 = vmatprep.subr.bf16.mxu1 %v536_v0  ;;  %v182_v1 = vld [vmem:[#allocation7 + $0x50] sm:$0xff]  ;;  %v183_v2 = vld [vmem:[#allocation7 + $0x58] sm:$0xff]  ;;  %v402_v3 = vpack.c.bf16 %v77_v62, %v76_v61  ;;  %v185_v7 = vld [vmem:[#allocation7 + $0x68] sm:$0xff] }
  0x46   :  { %387 = vmatpush3.bf16.msra.mxu0 %v386_v29  ;;  %v420_v4 = vpack.c.bf16 %v183_v2, %v182_v1  ;;  %v60_v5 = vld [vmem:[#allocation2] sm:$0xff]  ;;  %v423_v8 = vpack.c.bf16 %v185_v7, %v184_v6  ;;  %v187_v10 = vld [vmem:[#allocation7 + $0x78] sm:$0xff] }
  0x47   :  { %389 = vmatprep.subr.bf16.mxu0 %v388_v33  ;;  %v186_v9 = vld [vmem:[#allocation7 + $0x70] sm:$0xff] }
  0x48   :  { %412 = vmatpush3.bf16.msra.mxu1 %v411_v47  ;;  %v426_v11 = vpack.c.bf16 %v187_v10, %v186_v9  ;;  %v283_v14 = vld [vmem:[%s640_s2] ss:$0 sm:$0xff] }
  0x49   :  { %413 = vmatprep.subr.bf16.mxu1 %v536_v0 }
  0x4a   :  { %391 = vmatpush3.bf16.msra.mxu0 %v390_v41 }
  0x4b   :  { %393 = vmatprep.subr.bf16.mxu0 %v392_v42 }
  0x4c   :  { %415 = vmatpush3.bf16.msra.mxu1 %v414_v56 }
  0x4d   :  { %416 = vmatprep.subr.bf16.mxu1 %v536_v0 }
  0x4e   :  { %395 = vmatpush3.bf16.msra.mxu0 %v394_v50 }
  0x4f   :  { %397 = vmatprep.subr.bf16.mxu0 %v396_v51 }
  0x50   :  { %418 = vmatpush3.bf16.msra.mxu1 %v417_v63 }
  0x51   :  { %419 = vmatprep.subr.bf16.mxu1 %v536_v0 }
  0x52   :  { %399 = vmatpush3.bf16.msra.mxu0 %v398_v59 }
  0x53   :  { %401 = vmatprep.subr.bf16.mxu0 %v400_v60 }
  0x54   :  { %421 = vmatpush3.bf16.msra.mxu1 %v420_v4 }
  0x55   :  { %422 = vmatprep.subr.bf16.mxu1 %v536_v0 }
  0x56   :  { %403 = vmatpush3.bf16.msra.mxu0 %v402_v3 }
  0x58   :  { %424 = vmatpush3.bf16.msra.mxu1 %v423_v8 }
  0x59   :  { %166 = vmatmul.mubr.f32.vlgmr.msra.gmra.mrb[0].mxu0 %v60_v5  ;;  %425 = vmatprep.subr.bf16.mxu1 %v536_v0  ;;  %v284_v0 = vld [vmem:[%s642_s4] ss:$0 sm:$0xff] }
  0x5c   :  { %427 = vmatpush3.bf16.msra.mxu1 %v426_v11 }
 0x12c   :  { %v317_v13 = vpop.f32.mrb[0].mxu0 }
 0x12d   :  { %v318_v15 = vpop.f32.mrb[1].mxu0 }
 0x12e   :  { %v319_v16 = vadd.f32 %v318_v15, %v317_v13 }
 0x130   :  { %v168_v17 = vadd.f32 %v319_v16, %v283_v14 }
 0x132   :  { %v171_v18 = vmax.f32 %v168_v17, 0.0 }
 0x134   :  { %370 = vmatmul.mubr.f32.vlgmr.msra.gmra.mrb[0].mxu1 %v171_v18 }
 0x207   :  { %v261_v19 = vpop.f32.mrb[0].mxu1 }
 0x208   :  { %v262_v20 = vadd.f32 %v284_v0, %v261_v19  ;;  %v371_v21 = vpop.f32.mrb[1].mxu1 }
 0x20a   :  { %v265_v22 = vmax.f32 %v262_v20, 0.0 }
 0x20c   :  { %266 = vst [vmem:[#allocation8] sm:$0xff] %v265_v22 }
 0x20d   :  { %514 = shalt.err (!%p511_p0)
}
 0x20e   :  { %s515_s11 = scalar_lea.hbm %s643_s5, 128 }
 0x20f   :  { %p516_p1 = scmp.ne.s32.totalorder %s643_s5, %s515_s11  ;;  %p519_p2 = scmp.lt.u32.totalorder %s515_s11, %s643_s5 }
 0x211   :  { %p521_p3 = pnand %p519_p2, %p516_p1 }
 0x213   :  { %524 = shalt.err (!%p521_p3)
}
 0x214   :  { %276 = dma.vmem_to_hbm [thread:$0]  %s274_s8, 128, %s643_s5, [#allocation4]  }
 0x215   :  { %529 = dma.done.wait [#allocation4], 128  }
 0x216   :  { %530 = vsyncadd [#allocation4], 4294967168 }
 0x217   :  { %280 = vsyncpa [#allocation3], 1 }
 0x218   :  { %281 = vsyncpa [#allocation6], 1 }
 0x219   :  { %282 = vsyncpa [#allocation4], 1 }

</bundles_post_ra>
